<compile_context>
chip_gen: v5e
topology: v5e:2x2
jax: 0.10.0
libtpu: 0.0.40
codegen_flags: <defaults>
</compile_context>

<pallas_src>
import jax
import jax.numpy as jnp
from jax.experimental import pallas as pl
from jax.experimental.pallas import tpu as pltpu


def _layernorm2d_kernel(eps):
    def kernel(x_ref, w_ref, b_ref, o_ref):
        # x_ref block: (nb, C, tile_hw); w_ref / b_ref: (C, 1)
        x = x_ref[...].astype(jnp.float32)                  # (nb, C, T)
        u = jnp.mean(x, axis=1, keepdims=True)              # reduce over C (sublanes)
        d = x - u                                           # x is dead after this
        s = jnp.mean(d * d, axis=1, keepdims=True)          # biased variance (matches PyTorch)
        w = w_ref[...].astype(jnp.float32)[None, :, :]      # (1, C, 1)
        b = b_ref[...].astype(jnp.float32)[None, :, :]      # (1, C, 1)
        # rsqrt goes to the EUP slot (free-ish on a DMA-bound kernel).
        o_ref[...] = (w * (d * jax.lax.rsqrt(s + eps)) + b).astype(o_ref.dtype)
    return kernel


def _vmem_budget_bytes():
    """(usable scoped-VMEM budget, physical capacity) for the current generation."""
    try:
        cap = pltpu.get_tpu_info().vmem_capacity_bytes
    except Exception:
        cap = 64 * 1024 * 1024  # conservative (v7x-sized) fallback
    # ~96 MiB usable on v5e/v6e (128 MiB physical), ~48 MiB on v7x (64 MiB physical).
    return min((cap * 3) // 4, 96 * 1024 * 1024), cap


def _choose_tiling(N, C, HW, itemsize, vmem_budget, vmem_capacity, force_tile_hw=None):
    """Pick (nb, tile_hw): lane-dense, VMEM-budgeted tiling with a ragged last tile."""
    # Per-element VMEM cost of one block:
    #   2 input buffers + 2 output buffers (input dtype) + ~3 f32 temporaries.
    per_elem = 4 * itemsize + 3 * 4
    max_block_bytes = min(8 * 1024 * 1024, (vmem_budget * itemsize) // per_elem)

    if force_tile_hw is not None:
        tile_hw = force_tile_hw
    else:
        cap_lanes = (max_block_bytes // max(1, C * itemsize)) // 128 * 128
        cap_lanes = max(128, cap_lanes)
        # Whole spatial extent in one tile when it fits (block dim == full array dim
        # is always legal, even when HW % 128 != 0); otherwise the largest
        # multiple-of-128 tile that fits the budget, with a ragged (masked) final
        # block handled by Pallas — no wrapper pad/slice.
        tile_hw = HW if cap_lanes >= HW else cap_lanes
    spatial_steps = pl.cdiv(HW, tile_hw)

    # v7x (<= 64 MiB VMEM per TensorCore) has 2 TCs: keep >= 4 grid steps so both
    # cores get work; >= 2 elsewhere for pipeline overlap.
    min_steps = 4 if vmem_capacity <= 64 * 1024 * 1024 else 2

    # Batch several N rows per block to amortize per-grid-step overhead.
    per_row_bytes = C * tile_hw * itemsize
    nb = 1
    for cand in range(1, N + 1):
        if N % cand != 0 or cand * per_row_bytes > max_block_bytes:
            continue
        if (N // cand) * spatial_steps >= min_steps or N * spatial_steps < min_steps:
            nb = cand
    return nb, tile_hw


def layernorm2d(x, weight, bias, eps=1e-6, _force_tile_hw=None):
    """x: (N, C, H, W) NCHW; weight, bias: (C,). Returns (N, C, H, W)."""
    N, C, H, W = x.shape
    HW = H * W
    itemsize = jnp.dtype(x.dtype).itemsize
    w_itemsize = jnp.dtype(weight.dtype).itemsize

    # TODO(synk): for very small C (< 8 for f32, < 16 for bf16) the sublane axis is
    # partially padded inside each vreg; folding spatial positions next to C would
    # recover that VMEM/VPU slack, but HBM traffic (the bottleneck) is unchanged.
    vmem_budget, vmem_capacity = _vmem_budget_bytes()
    nb, tile_hw = _choose_tiling(
        N, C, HW, itemsize, vmem_budget, vmem_capacity, _force_tile_hw
    )

    x_flat = x.reshape(N, C, HW)
    w2 = weight.reshape(C, 1)
    b2 = bias.reshape(C, 1)

    grid = (N // nb, pl.cdiv(HW, tile_hw))

    out = pl.pallas_call(
        _layernorm2d_kernel(eps),
        out_shape=jax.ShapeDtypeStruct((N, C, HW), x.dtype),
        grid_spec=pltpu.PrefetchScalarGridSpec(
            num_scalar_prefetch=0,
            grid=grid,
            in_specs=[
                pl.BlockSpec((nb, C, tile_hw), lambda n, t: (n, 0, t)),
                pl.BlockSpec((C, 1), lambda n, t: (0, 0)),
                pl.BlockSpec((C, 1), lambda n, t: (0, 0)),
            ],
            out_specs=pl.BlockSpec((nb, C, tile_hw), lambda n, t: (n, 0, t)),
        ),
        compiler_params=pltpu.CompilerParams(
            dimension_semantics=("parallel", "parallel"),
            vmem_limit_bytes=int(vmem_budget),
        ),
        cost_estimate=pl.CostEstimate(
            flops=7 * N * C * HW,
            transcendentals=N * HW,
            bytes_accessed=2 * N * C * HW * itemsize + 2 * C * w_itemsize,
        ),
    )(x_flat, w2, b2)

    return out.reshape(N, C, H, W)


def layernorm2d_ref(x, weight, bias, eps=1e-6):
    # Pure-JAX reference matching the PyTorch forward exactly.
    u = jnp.mean(x, axis=1, keepdims=True)
    s = jnp.mean((x - u) ** 2, axis=1, keepdims=True)
    xn = (x - u) / jnp.sqrt(s + eps)
    return weight[None, :, None, None] * xn + bias[None, :, None, None]


if __name__ == "__main__":
    key = jax.random.PRNGKey(0)
    k1, k2, k3, k4 = jax.random.split(key, 4)

    # Primary test: matches nn.Parameter(torch.ones/zeros(C)) init.
    N, C, H, W = 2, 4, 16, 16
    x = jax.random.normal(k1, (N, C, H, W), dtype=jnp.float32)
    weight = jnp.ones((C,), dtype=jnp.float32)
    bias = jnp.zeros((C,), dtype=jnp.float32)

    out = jax.block_until_ready(layernorm2d(x, weight, bias, eps=1e-6))
    ref = layernorm2d_ref(x, weight, bias, eps=1e-6)
    assert out.shape == (N, C, H, W)
    assert jnp.allclose(out, ref, atol=1e-5, rtol=1e-5), "mismatch vs reference (aligned)"

    # Unaligned spatial extent (HW % 128 != 0), non-trivial affine params.
    N2, C2, H2, W2 = 1, 8, 7, 9
    x2 = jax.random.normal(k2, (N2, C2, H2, W2), dtype=jnp.float32)
    w2 = 1.0 + 0.1 * jax.random.normal(k3, (C2,), dtype=jnp.float32)
    b2 = 0.1 * jax.random.normal(k4, (C2,), dtype=jnp.float32)
    out2 = jax.block_until_ready(layernorm2d(x2, w2, b2, eps=1e-6))
    ref2 = layernorm2d_ref(x2, w2, b2, eps=1e-6)
    assert jnp.allclose(out2, ref2, atol=1e-5, rtol=1e-5), "mismatch vs reference (unaligned)"

    # Exercise the ragged-last-tile path (forced small tile so the grid has a
    # masked final spatial block).
    N3, C3, H3, W3 = 2, 4, 16, 17  # HW = 272 -> tiles of 128 with ragged last block
    x3 = jax.random.normal(k2, (N3, C3, H3, W3), dtype=jnp.float32)
    w3 = jnp.ones((C3,), dtype=jnp.float32)
    b3 = jnp.zeros((C3,), dtype=jnp.float32)
    out3 = jax.block_until_ready(layernorm2d(x3, w3, b3, eps=1e-6, _force_tile_hw=128))
    ref3 = layernorm2d_ref(x3, w3, b3, eps=1e-6)
    assert jnp.allclose(out3, ref3, atol=1e-5, rtol=1e-5), "mismatch vs reference (ragged)"

    print("KERNEL_OK")
</pallas_src>

<mosaic_0001>
module attributes {stable_mosaic.version = 11 : i64} {
  func.func @kernel(%arg0: i32, %arg1: i32, %arg2: memref<2x4x256xf32, #tpu.memory_space<vmem>>, %arg3: memref<4x1xf32, #tpu.memory_space<vmem>>, %arg4: memref<4x1xf32, #tpu.memory_space<vmem>>, %arg5: memref<2x4x256xf32, #tpu.memory_space<vmem>>) attributes {dimension_semantics = [#tpu.dimension_semantics<parallel>, #tpu.dimension_semantics<parallel>], iteration_bounds = array<i64: 1, 1>, scalar_prefetch = 0 : i64, scratch_operands = 0 : i64, tpu.core_type = #tpu.core_type<tc>, window_params = [{transform_indices = @transform_0, window_bounds = array<i64: 2, 4, 256>}, {pipeline_mode = #tpu.pipeline_mode<synchronous>, transform_indices = @transform_1, window_bounds = array<i64: 4, 1>}, {pipeline_mode = #tpu.pipeline_mode<synchronous>, transform_indices = @transform_2, window_bounds = array<i64: 4, 1>}, {transform_indices = @transform_3, window_bounds = array<i64: 2, 4, 256>}]} {
    %c0 = arith.constant 0 : index
    %c0_0 = arith.constant 0 : index
    %c0_1 = arith.constant 0 : index
    %0 = vector.load %arg2[%c0, %c0_0, %c0_1] : memref<2x4x256xf32, #tpu.memory_space<vmem>>, vector<2x4x256xf32>
    %cst = arith.constant dense<0.000000e+00> : vector<2x256xf32>
    %1 = vector.multi_reduction <add>, %0, %cst [1] : vector<2x4x256xf32> to vector<2x256xf32>
    %2 = vector.shape_cast %1 : vector<2x256xf32> to vector<2x1x256xf32>
    %cst_2 = arith.constant 4.000000e+00 : f32
    %3 = vector.broadcast %cst_2 : f32 to vector<2x1x256xf32>
    %4 = arith.divf %2, %3 : vector<2x1x256xf32>
    %5 = vector.broadcast %4 : vector<2x1x256xf32> to vector<2x4x256xf32>
    %6 = arith.subf %0, %5 : vector<2x4x256xf32>
    %7 = arith.mulf %6, %6 : vector<2x4x256xf32>
    %cst_3 = arith.constant dense<0.000000e+00> : vector<2x256xf32>
    %8 = vector.multi_reduction <add>, %7, %cst_3 [1] : vector<2x4x256xf32> to vector<2x256xf32>
    %9 = vector.shape_cast %8 : vector<2x256xf32> to vector<2x1x256xf32>
    %cst_4 = arith.constant 4.000000e+00 : f32
    %10 = vector.broadcast %cst_4 : f32 to vector<2x1x256xf32>
    %11 = arith.divf %9, %10 : vector<2x1x256xf32>
    %c0_5 = arith.constant 0 : index
    %c0_6 = arith.constant 0 : index
    %12 = vector.load %arg3[%c0_5, %c0_6] : memref<4x1xf32, #tpu.memory_space<vmem>>, vector<4x1xf32>
    %13 = vector.shape_cast %12 : vector<4x1xf32> to vector<1x4x1xf32>
    %c0_7 = arith.constant 0 : index
    %c0_8 = arith.constant 0 : index
    %14 = vector.load %arg4[%c0_7, %c0_8] : memref<4x1xf32, #tpu.memory_space<vmem>>, vector<4x1xf32>
    %15 = vector.shape_cast %14 : vector<4x1xf32> to vector<1x4x1xf32>
    %cst_9 = arith.constant 9.99999997E-7 : f32
    %16 = vector.broadcast %cst_9 : f32 to vector<2x1x256xf32>
    %17 = arith.addf %11, %16 : vector<2x1x256xf32>
    %18 = math.rsqrt %17 : vector<2x1x256xf32>
    %19 = vector.broadcast %18 : vector<2x1x256xf32> to vector<2x4x256xf32>
    %20 = arith.mulf %6, %19 : vector<2x4x256xf32>
    %21 = vector.broadcast %13 : vector<1x4x1xf32> to vector<2x4x256xf32>
    %22 = arith.mulf %21, %20 : vector<2x4x256xf32>
    %23 = vector.broadcast %15 : vector<1x4x1xf32> to vector<2x4x256xf32>
    %24 = arith.addf %22, %23 : vector<2x4x256xf32>
    %c0_10 = arith.constant 0 : index
    %c0_11 = arith.constant 0 : index
    %c0_12 = arith.constant 0 : index
    %25 = vector.load %arg5[%c0_10, %c0_11, %c0_12] : memref<2x4x256xf32, #tpu.memory_space<vmem>>, vector<2x4x256xf32>
    tpu.vector_store %arg5[%c0_10, %c0_11, %c0_12], %24 {strides = array<i32>} : memref<2x4x256xf32, #tpu.memory_space<vmem>>, vector<2x4x256xf32>,
    return
  }
  func.func @transform_0(%arg0: i32, %arg1: i32) -> (i32, i32, i32) {
    %c0_i32 = arith.constant 0 : i32
    %c0_i32_0 = arith.constant 0 : i32
    return %arg0, %c0_i32, %arg1 : i32, i32, i32
  }
  func.func @transform_1(%arg0: i32, %arg1: i32) -> (i32, i32) {
    %c0_i32 = arith.constant 0 : i32
    %c0_i32_0 = arith.constant 0 : i32
    %c0_i32_1 = arith.constant 0 : i32
    return %c0_i32, %c0_i32_0 : i32, i32
  }
  func.func @transform_2(%arg0: i32, %arg1: i32) -> (i32, i32) {
    %c0_i32 = arith.constant 0 : i32
    %c0_i32_0 = arith.constant 0 : i32
    %c0_i32_1 = arith.constant 0 : i32
    return %c0_i32, %c0_i32_0 : i32, i32
  }
  func.func @transform_3(%arg0: i32, %arg1: i32) -> (i32, i32, i32) {
    %c0_i32 = arith.constant 0 : i32
    %c0_i32_0 = arith.constant 0 : i32
    return %arg0, %c0_i32, %arg1 : i32, i32, i32
  }
}

</mosaic_0001>

<bundles_post_ra>
// kernel: tpu_custom_call.1
= control target key start
LH: loop header
LB: loop body
LE: loop exit
PB: predicated region body
PF: predicated region fallthrough
CT: control target
= control target key end

     0   :  { %8 = vsyncpa [#allocation3], 0  ;;  %s414_s0 = inlined_call_operand.hbm [shape: f32[2,4,256], index: 0, kind: input, shape index: {}]   ;;  %s415_s1 = inlined_call_operand.vmem [shape: f32[4,1], index: 1, kind: input, shape index: {}]   ;;  %s416_s2 = inlined_call_operand.vmem [shape: f32[4,1], index: 2, kind: input, shape index: {}]   ;;  %s417_s3 = inlined_call_operand.hbm [shape: f32[2,4,256], index: 3, kind: output, shape index: {}]  }
   0x1   :  { %9 = vsyncpa [#allocation4], 0  ;;  %s14_s14 = sshll.u32 %s414_s0, 4  ;;  %s334_s15 = smov [#allocation2]   ;;  %s15_s14 = int_to_ptr.hbm [resolvable:$true] %s14_s14 }
   0x2   :  { %s16_s16 = sshll.u32 %s334_s15, 4  ;;  %s335_s17 = smov 128   ;;  %s17_s16 = int_to_ptr.vmem [resolvable:$true] %s16_s16 }
   0x3   :  { %s336_s18 = smov 8  }
   0x4   :  { %22 = dma.hbm_to_vmem [thread:$0]  %s15_s14, 256, %s17_s16, [#allocation3], %s335_s17, %s335_s17, %s336_s18  }
   0x5   :  { %330 = dma.done.wait [#allocation3], 256  }
   0x6   :  { %331 = vsyncadd [#allocation3], 4294967040  ;;  %v337_v0 = vmov 0   ;;  %v145_v1 = vld [vmem:[%s415_s1] sm:$0xf]  ;;  %v31_v2 = vld [vmem:[#allocation2] sm:$0xff] }
   0x7   :  { %271 = vset.pattern.permute.xlu0 %v337_v0  ;;  %v32_v3 = vld [vmem:[#allocation2 + $0x8] sm:$0xff]  ;;  %35 = vst [vmem:[#allocation1] ss:$2 sm:$0xff] %v31_v2  ;;  %v338_v4 = vmov 4.0   ;;  %v146_v5 = vld [vmem:[%s416_s2] sm:$0xf] }
   0x8   :  { %205 = vperm.xlu0 %271, %v145_v1   ;;  %39 = vst [vmem:[#allocation1 + $0x10] ss:$2 sm:$0xff] %v32_v3  ;;  %272 = vrcp.f32 %v338_v4  ;;  %vm46_vm0 = vcmask 1043456   ;;  %s339_s1 = smov [#allocation5]   ;;  %s252_s24 = sshll.u32 %s417_s3, 4  ;;  %s253_s24 = int_to_ptr.hbm [resolvable:$true] %s252_s24 }
   0x9   :  { %s250_s2 = sshll.u32 %s339_s1, 4  ;;  %s251_s2 = int_to_ptr.vmem [resolvable:$true] %s250_s2 }
   0xe   :  { %v36_v6 = vld.sshfl [vmem:[#allocation1] sm:$0xff pattern:$0x75316420]  ;;  %v37_v7 = vld.sshfl [vmem:[#allocation1 + $0x8] sm:$0xff pattern:$0x75316420]  ;;  %v273_v8 = vpop.eup %272 }
   0xf   :  { %v40_v9 = vld.sshfl [vmem:[#allocation1 + $0x10] sm:$0xff pattern:$0x75316420]  ;;  %v41_v10 = vld.sshfl [vmem:[#allocation1 + $0x18] sm:$0xff pattern:$0x75316420]  ;;  %vm80_vm1 = vweird.f32 %v273_v8 }
  0x10   :  { %227 = vperm.xlu0 %271, %v146_v5   ;;  %v76_v11 = vmul.f32 4.0, %v273_v8  ;;  %v47_v12 = vsel %vm46_vm0, %v36_v6, 0.0  ;;  %v54_v13 = vsel %vm46_vm0, %v37_v7, 0.0  ;;  %v61_v14 = vsel %vm46_vm0, %v40_v9, 0.0 }
  0x11   :  { %v48_v15 = vrot.slane %v47_v12, 4  ;;  %v55_v16 = vrot.slane %v54_v13, 4  ;;  %v62_v17 = vrot.slane %v61_v14, 4  ;;  %v68_v18 = vsel %vm46_vm0, %v41_v10, 0.0 }
  0x12   :  { %v77_v19 = vsub.f32 1.0, %v76_v11  ;;  %v69_v20 = vrot.slane %v68_v18, 4 }
  0x13   :  { %v49_v21 = vadd.f32 %v48_v15, %v47_v12  ;;  %v56_v22 = vadd.f32 %v55_v16, %v54_v13  ;;  %v63_v23 = vadd.f32 %v62_v17, %v61_v14 }
  0x14   :  { %v78_v24 = vmul.f32 %v273_v8, %v77_v19  ;;  %v70_v25 = vadd.f32 %v69_v20, %v68_v18 }
  0x15   :  { %v50_v26 = vrot.slane %v49_v21, 2  ;;  %v57_v27 = vrot.slane %v56_v22, 2  ;;  %v64_v28 = vrot.slane %v63_v23, 2 }
  0x16   :  { %v79_v29 = vadd.f32 %v273_v8, %v78_v24  ;;  %v71_v30 = vrot.slane %v70_v25, 2 }
  0x17   :  { %v51_v31 = vadd.f32 %v50_v26, %v49_v21  ;;  %v58_v32 = vadd.f32 %v57_v27, %v56_v22  ;;  %v65_v33 = vadd.f32 %v64_v28, %v63_v23 }
  0x18   :  { %v72_v34 = vadd.f32 %v71_v30, %v70_v25  ;;  %v81_v38 = vsel %vm80_vm1, %v273_v8, %v79_v29 }
  0x19   :  { %v52_v35 = vrot.slane %v51_v31, 1  ;;  %v59_v36 = vrot.slane %v58_v32, 1  ;;  %v66_v37 = vrot.slane %v65_v33, 1 }
  0x1a   :  { %v73_v39 = vrot.slane %v72_v34, 1 }
  0x1b   :  { %v53_v40 = vadd.f32 %v52_v35, %v51_v31  ;;  %v60_v41 = vadd.f32 %v59_v36, %v58_v32  ;;  %v67_v42 = vadd.f32 %v66_v37, %v65_v33 }
  0x1c   :  { %v74_v43 = vadd.f32 %v73_v39, %v72_v34 }
  0x1d   :  { %v82_v44 = vmul.f32 %v81_v38, %v53_v40  ;;  %v83_v45 = vmul.f32 %v81_v38, %v60_v41  ;;  %v84_v46 = vmul.f32 %v81_v38, %v67_v42 }
  0x1e   :  { %v85_v47 = vmul.f32 %v81_v38, %v74_v43 }
  0x1f   :  { %v90_v48 = vrot.slane %v83_v45, 4 }
  0x20   :  { %v91_v49 = vrot.slane %v85_v47, 4 }
  0x21   :  { %v92_v50 = vsel %vm46_vm0, %v82_v44, %v90_v48 }
  0x22   :  { %v93_v51 = vsel %vm46_vm0, %v84_v46, %v91_v49  ;;  %v378_v52 = vsub.f32 %v31_v2, %v92_v50 }
  0x23   :  { %v380_v53 = vsub.f32 %v32_v3, %v93_v51 }
  0x24   :  { %v98_v54 = vmul.f32 %v378_v52, %v378_v52 }
  0x25   :  { %v99_v55 = vmul.f32 %v380_v53, %v380_v53 }
  0x26   :  { %102 = vst [vmem:[#allocation1] ss:$2 sm:$0xff] %v98_v54 }
  0x27   :  { %106 = vst [vmem:[#allocation1 + $0x10] ss:$2 sm:$0xff] %v99_v55 }
  0x2d   :  { %v103_v56 = vld.sshfl [vmem:[#allocation1] sm:$0xff pattern:$0x75316420]  ;;  %v104_v57 = vld.sshfl [vmem:[#allocation1 + $0x8] sm:$0xff pattern:$0x75316420] }
  0x2e   :  { %v107_v58 = vld.sshfl [vmem:[#allocation1 + $0x10] sm:$0xff pattern:$0x75316420]  ;;  %v108_v59 = vld.sshfl [vmem:[#allocation1 + $0x18] sm:$0xff pattern:$0x75316420] }
  0x2f   :  { %v113_v60 = vsel %vm46_vm0, %v103_v56, 0.0  ;;  %v120_v61 = vsel %vm46_vm0, %v104_v57, 0.0  ;;  %v127_v62 = vsel %vm46_vm0, %v107_v58, 0.0  ;;  %v134_v63 = vsel %vm46_vm0, %v108_v59, 0.0 }
  0x30   :  { %v114_v0 = vrot.slane %v113_v60, 4  ;;  %v121_v1 = vrot.slane %v120_v61, 4  ;;  %v128_v2 = vrot.slane %v127_v62, 4  ;;  %v135_v3 = vrot.slane %v134_v63, 4 }
  0x32   :  { %v115_v4 = vadd.f32 %v114_v0, %v113_v60  ;;  %v122_v5 = vadd.f32 %v121_v1, %v120_v61  ;;  %v129_v6 = vadd.f32 %v128_v2, %v127_v62  ;;  %v136_v7 = vadd.f32 %v135_v3, %v134_v63 }
  0x34   :  { %v116_v8 = vrot.slane %v115_v4, 2  ;;  %v123_v9 = vrot.slane %v122_v5, 2  ;;  %v130_v10 = vrot.slane %v129_v6, 2  ;;  %v137_v11 = vrot.slane %v136_v7, 2 }
  0x36   :  { %v117_v12 = vadd.f32 %v116_v8, %v115_v4  ;;  %v124_v13 = vadd.f32 %v123_v9, %v122_v5  ;;  %v131_v14 = vadd.f32 %v130_v10, %v129_v6  ;;  %v138_v15 = vadd.f32 %v137_v11, %v136_v7 }
  0x38   :  { %v118_v16 = vrot.slane %v117_v12, 1  ;;  %v125_v17 = vrot.slane %v124_v13, 1  ;;  %v132_v18 = vrot.slane %v131_v14, 1  ;;  %v139_v19 = vrot.slane %v138_v15, 1 }
  0x3a   :  { %v119_v20 = vadd.f32 %v118_v16, %v117_v12  ;;  %v126_v21 = vadd.f32 %v125_v17, %v124_v13  ;;  %v133_v22 = vadd.f32 %v132_v18, %v131_v14  ;;  %v140_v23 = vadd.f32 %v139_v19, %v138_v15 }
  0x3c   :  { %v141_v24 = vmul.f32 %v119_v20, %v81_v38  ;;  %v142_v25 = vmul.f32 %v126_v21, %v81_v38  ;;  %v143_v26 = vmul.f32 %v133_v22, %v81_v38  ;;  %v144_v27 = vmul.f32 %v140_v23, %v81_v38 }
  0x3e   :  { %v147_v28 = vadd.f32 1e-06, %v141_v24  ;;  %v148_v29 = vadd.f32 1e-06, %v142_v25  ;;  %v149_v30 = vadd.f32 1e-06, %v143_v26 }
  0x3f   :  { %v150_v31 = vadd.f32 1e-06, %v144_v27 }
  0x40   :  { %274 = vrsqrt.f32 %v147_v28  ;;  %vm167_vm2 = vweird.f32 %v148_v29  ;;  %vm157_vm4 = vweird.f32 %v147_v28  ;;  %vm177_vm7 = vweird.f32 %v149_v30 }
  0x41   :  { %276 = vrsqrt.f32 %v148_v29  ;;  %vm187_vm8 = vweird.f32 %v150_v31 }
  0x42   :  { %278 = vrsqrt.f32 %v149_v30 }
  0x43   :  { %280 = vrsqrt.f32 %v150_v31 }
  0x46   :  { %v275_v32 = vpop.eup %274 }
  0x47   :  { %v277_v33 = vpop.eup %276  ;;  %v152_v34 = vmul.f32 %v275_v32, %v147_v28  ;;  %vm158_vm5 = vweird.f32 %v275_v32 }
  0x48   :  { %v279_v35 = vpop.eup %278  ;;  %v162_v36 = vmul.f32 %v277_v33, %v148_v29  ;;  %vm168_vm3 = vweird.f32 %v277_v33  ;;  %vm394_vm10 = vmor %vm157_vm4, %vm158_vm5 }
  0x49   :  { %v281_v37 = vpop.eup %280  ;;  %v153_v39 = vmul.f32 %v275_v32, %v152_v34  ;;  %v172_v40 = vmul.f32 %v279_v35, %v149_v30  ;;  %vm390_vm6 = vmor %vm167_vm2, %vm168_vm3  ;;  %vm178_vm11 = vweird.f32 %v279_v35 }
  0x4a   :  { %v163_v41 = vmul.f32 %v277_v33, %v162_v36  ;;  %v182_v42 = vmul.f32 %v281_v37, %v150_v31  ;;  %vm188_vm9 = vweird.f32 %v281_v37  ;;  %vm179_vm13 = vmor %vm177_vm7, %vm178_vm11 }
  0x4b   :  { %v154_v43 = vmul.f32 0.5, %v153_v39  ;;  %v173_v38 = vmul.f32 %v279_v35, %v172_v40  ;;  %vm189_vm12 = vmor %vm187_vm8, %vm188_vm9 }
  0x4c   :  { %v164_v44 = vmul.f32 0.5, %v163_v41  ;;  %v183_v47 = vmul.f32 %v281_v37, %v182_v42 }
  0x4d   :  { %v155_v45 = vsub.f32 1.5, %v154_v43  ;;  %v174_v46 = vmul.f32 0.5, %v173_v38 }
  0x4e   :  { %v165_v48 = vsub.f32 1.5, %v164_v44  ;;  %v184_v55 = vmul.f32 0.5, %v183_v47 }
  0x4f   :  { %v156_v50 = vmul.f32 %v275_v32, %v155_v45  ;;  %v175_v54 = vsub.f32 1.5, %v174_v46 }
  0x50   :  { %v166_v56 = vmul.f32 %v277_v33, %v165_v48  ;;  %v185_v58 = vsub.f32 1.5, %v184_v55 }
  0x51   :  { %v176_v57 = vmul.f32 %v279_v35, %v175_v54  ;;  %v160_v59 = vsel %vm394_vm10, %v275_v32, %v156_v50 }
  0x52   :  { %v170_v60 = vsel %vm390_vm6, %v277_v33, %v166_v56  ;;  %v186_v61 = vmul.f32 %v281_v37, %v185_v58 }
  0x53   :  { %v195_v62 = vrot.slane %v170_v60, 4  ;;  %v180_v63 = vsel %vm179_vm13, %v279_v35, %v176_v57 }
  0x54   :  { %v190_v0 = vsel %vm189_vm12, %v281_v37, %v186_v61 }
  0x55   :  { %v197_v1 = vsel %vm46_vm0, %v160_v59, %v195_v62  ;;  %v196_v2 = vrot.slane %v190_v0, 4 }
  0x56   :  { %v201_v3 = vmul.f32 %v197_v1, %v378_v52 }
  0x57   :  { %v198_v4 = vsel %vm46_vm0, %v180_v63, %v196_v2 }
  0x58   :  { %210 = vst [vmem:[#allocation1] ss:$2 sm:$0xff] %v201_v3  ;;  %v202_v5 = vmul.f32 %v198_v4, %v380_v53 }
  0x5a   :  { %214 = vst [vmem:[#allocation1 + $0x10] ss:$2 sm:$0xff] %v202_v5 }
  0x5f   :  { %v212_v7 = vld.sshfl [vmem:[#allocation1 + $0x8] sm:$0xff pattern:$0x75316420]  ;;  %v211_v9 = vld.sshfl [vmem:[#allocation1] sm:$0xff pattern:$0x75316420] }
  0x61   :  { %v216_v8 = vld.sshfl [vmem:[#allocation1 + $0x18] sm:$0xff pattern:$0x75316420]  ;;  %v215_v10 = vld.sshfl [vmem:[#allocation1 + $0x10] sm:$0xff pattern:$0x75316420] }
  0x7a   :  { %v206_v6 = vpop.permute.xlu0 %205 }
  0x7b   :  { %v222_v11 = vmul.f32 %v212_v7, %v206_v6  ;;  %v224_v12 = vmul.f32 %v216_v8, %v206_v6  ;;  %v221_v14 = vmul.f32 %v211_v9, %v206_v6  ;;  %v223_v15 = vmul.f32 %v215_v10, %v206_v6 }
  0x82   :  { %v228_v13 = vpop.permute.xlu0 %227 }
  0x83   :  { %v231_v16 = vadd.f32 %v228_v13, %v222_v11  ;;  %v233_v17 = vadd.f32 %v228_v13, %v224_v12  ;;  %v230_v52 = vadd.f32 %v228_v13, %v221_v14  ;;  %v232_v53 = vadd.f32 %v228_v13, %v223_v15 }
  0x85   :  { %v238_v18 = vrot.slane %v231_v16, 4  ;;  %v239_v19 = vrot.slane %v233_v17, 4 }
  0x87   :  { %v240_v20 = vsel %vm46_vm0, %v230_v52, %v238_v18  ;;  %v241_v21 = vsel %vm46_vm0, %v232_v53, %v239_v19 }
  0x88   :  { %244 = vst [vmem:[#allocation5] sm:$0xff] %v240_v20 }
  0x89   :  { %245 = vst [vmem:[#allocation5 + $0x8] sm:$0xff] %v241_v21 }
  0x8a   :  { %258 = dma.vmem_to_hbm [thread:$0]  %s251_s2, 256, %s253_s24, [#allocation4], %s335_s17, %s335_s17, %s336_s18  }
  0x8b   :  { %332 = dma.done.wait [#allocation4], 256  }
  0x8c   :  { %333 = vsyncadd [#allocation4], 4294967040 }
  0x8d   :  { %263 = vsyncpa [#allocation3], 1 }
  0x8e   :  { %264 = vsyncpa [#allocation4], 1 }

</bundles_post_ra>
